<compile_context>
chip_gen: v7x
topology: tpu7x:2x2x1
jax: 0.10.0
libtpu: 0.0.40
codegen_flags: <defaults>
</compile_context>

<pallas_src>
import functools

import jax
import jax.numpy as jnp
from jax import lax
from jax.experimental import pallas as pl
from jax.experimental.pallas import tpu as pltpu


def _round_up(x: int, m: int) -> int:
    return ((x + m - 1) // m) * m


def _agg_kernel(x_ref, w_ref, b_ref, pool_ref, aux_ref, pooled_ref, acc_ref,
                *, tk: int, w_resident: bool, inv_v: float):
    # x_ref:      (TM, TK)      f32  — TM = GB*V rows of flattened views
    # w_ref:      (F_pad, feat) bf16 resident slab, or (TK, feat) bf16 streamed
    # b_ref:      (1, feat)     f32
    # pool_ref:   (GB, TM)      f32  — exact 0/1 view-membership matrix
    # aux_ref:    (TM, feat)    f32  — per-view features
    # pooled_ref: (GB, feat)    f32  — per-batch mean over views
    # acc_ref:    (TM, feat)    f32 VMEM accumulator (persists over the K axis)
    k = pl.program_id(1)

    @pl.when(k == 0)
    def _():
        acc_ref[...] = jnp.zeros_like(acc_ref)

    # In-register f32 -> bf16 cast (cheap VPU work, hidden under the x DMA).
    x_bf = x_ref[...].astype(jnp.bfloat16)
    if w_resident:
        start = pl.multiple_of(k * tk, 128)
        w_blk = w_ref[pl.ds(start, tk), :]      # slice the resident slab
    else:
        w_blk = w_ref[...]                      # streamed (TK, feat) tile

    # MXU matmul on bf16 operands, f32 accumulation.
    acc_ref[...] += jnp.dot(x_bf, w_blk, preferred_element_type=jnp.float32)

    @pl.when(k == pl.num_programs(1) - 1)
    def _():
        feats = acc_ref[...] + b_ref[...]       # (TM, feat) f32
        aux_ref[...] = feats
        # Fused mean over the V views of every batch group while the tile is
        # resident: exact 0/1 membership matmul, then a scalar 1/V scale.
        pooled_ref[...] = jnp.dot(pool_ref[...], feats,
                                  preferred_element_type=jnp.float32
                                  ) * jnp.float32(inv_v)


@functools.partial(
    jax.jit, static_argnames=("tk_target", "max_resident_weight_bytes"))
def view_avg_aggregate(mvimages, weight, bias, *,
                       tk_target: int = 1024,
                       max_resident_weight_bytes: int = 8 * 1024 * 1024):
    """mvimages: (B, V, C, D, H, W); weight: (F, feat); bias: (feat,)."""
    B, V, C, D, H, W = mvimages.shape
    F = C * D * H * W
    feat = weight.shape[1]
    M_real = B * V

    # ---------------- tile geometry ----------------
    # M axis: fold (B, V) into M = B*V rows.  GB whole batch elements per
    # tile so the fused view-mean stays tile-local.
    target_tm = 512
    if M_real <= target_tm or B <= 8:
        GB = B                                   # single M tile, no M padding
    else:
        GB = max(8, (min(target_tm // V, B // 2) // 8) * 8)
        # shave GB while it causes excessive batch padding (> 25% of B)
        while GB > 8 and B % GB and (_round_up(B, GB) - B) * 4 > B:
            GB -= 8
    B_pad = _round_up(B, GB)
    TM = GB * V
    M_pad = B_pad * V
    grid_m = M_pad // TM

    # K axis: TK divides round_up(F,128) exactly (no K over-padding beyond the
    # 128 tail), bounded by tk_target and the x-tile double-buffer budget.
    F128 = _round_up(F, 128)
    c = F128 // 128
    tk_cap = min(tk_target, max(128, ((8 << 20) // (8 * TM)) // 128 * 128))
    nk_min = max(1, -(-F128 // tk_cap))
    nk = next((n for n in range(nk_min, c + 1) if c % n == 0), c)
    TK = F128 // nk
    F_pad = F128
    grid_k = nk

    # Weight: keep the whole (F_pad, feat) bf16 slab VMEM-resident (DMA'd only
    # once, constant block index) when it fits the budget; otherwise stream
    # (TK, feat) tiles per K step.
    w_bytes = F_pad * feat * 2
    w_resident = w_bytes <= max_resident_weight_bytes

    # ---------------- operand packing (plain JAX glue) ----------------
    x = mvimages.reshape(M_real, F)              # free (contiguous) reshape
    if x.dtype != jnp.float32:
        x = x.astype(jnp.float32)
    if M_pad > M_real or F_pad > F:
        # Zero-pad only the K tail (<= 127 cols) and whole padded batches.
        # Zero rows keep the fused pooling matmul NaN-free.
        x = jnp.pad(x, ((0, M_pad - M_real), (0, F_pad - F)))

    w = weight.astype(jnp.bfloat16)
    if F_pad > F:
        w = jnp.pad(w, ((0, F_pad - F), (0, 0)))
    b2 = bias.astype(jnp.float32).reshape(1, feat)

    # Exact 0/1 membership matrix: row g marks rows [g*V, (g+1)*V) of a tile.
    g_idx = lax.broadcasted_iota(jnp.int32, (GB, TM), 0)
    r_idx = lax.broadcasted_iota(jnp.int32, (GB, TM), 1)
    pool01 = (r_idx // V == g_idx).astype(jnp.float32)

    kernel = functools.partial(_agg_kernel, tk=TK, w_resident=w_resident,
                               inv_v=1.0 / V)

    if w_resident:
        w_spec = pl.BlockSpec((F_pad, feat), lambda m, k: (0, 0))
    else:
        w_spec = pl.BlockSpec((TK, feat), lambda m, k: (k, 0))

    w_read = w_bytes if w_resident else grid_m * F_pad * feat * 2
    cost = pl.CostEstimate(
        flops=2 * M_pad * F_pad * feat + 2 * grid_m * GB * TM * feat,
        transcendentals=0,
        bytes_accessed=(M_pad * F_pad * 4 + w_read
                        + M_pad * feat * 4 + B_pad * feat * 4
                        + GB * TM * 4 + feat * 4))

    vmem_est = (2 * TM * TK * 4                                  # x dbl-buffer
                + (2 * w_bytes if w_resident else 2 * TK * feat * 2)
                + 2 * TM * feat * 4 + 2 * GB * feat * 4          # outputs
                + TM * feat * 4 + 2 * GB * TM * 4 + 2 * feat * 4)
    vmem_limit = int(min(max(2 * vmem_est, 32 << 20), 48 << 20))

    aux_flat, pooled_pad = pl.pallas_call(
        kernel,
        out_shape=(
            jax.ShapeDtypeStruct((M_pad, feat), jnp.float32),
            jax.ShapeDtypeStruct((B_pad, feat), jnp.float32),
        ),
        grid_spec=pltpu.PrefetchScalarGridSpec(
            num_scalar_prefetch=0,
            grid=(grid_m, grid_k),
            in_specs=[
                pl.BlockSpec((TM, TK), lambda m, k: (m, k)),     # x (f32)
                w_spec,                                          # weight bf16
                pl.BlockSpec((1, feat), lambda m, k: (0, 0)),    # bias
                pl.BlockSpec((GB, TM), lambda m, k: (0, 0)),     # pool 0/1
            ],
            out_specs=[
                pl.BlockSpec((TM, feat), lambda m, k: (m, 0)),   # aux
                pl.BlockSpec((GB, feat), lambda m, k: (m, 0)),   # pooled
            ],
            scratch_shapes=[pltpu.VMEM((TM, feat), jnp.float32)],
        ),
        compiler_params=pltpu.CompilerParams(
            dimension_semantics=("parallel", "arbitrary"),
            vmem_limit_bytes=vmem_limit),
        cost_estimate=cost,
    )(x, w, b2, pool01)

    # Unpad / reshape back to the module's output layout (no-ops when the
    # problem needed no padding).
    aux = aux_flat[:M_real].reshape(B, V, feat)
    pooled = pooled_pad[:B]
    # torch.mean(aux, dim=1).squeeze()
    return jnp.squeeze(pooled), aux


def _reference(mvimages, weight, bias):
    """Pure-JAX reference with the same bf16 operand rounding as the kernel."""
    B, V = mvimages.shape[:2]
    F, feat = weight.shape
    x = mvimages.reshape(B * V, F).astype(jnp.bfloat16).astype(jnp.float32)
    w = weight.astype(jnp.bfloat16).astype(jnp.float32)
    aux = (x @ w + bias.astype(jnp.float32)).reshape(B, V, feat)
    pooled = jnp.squeeze(jnp.mean(aux, axis=1))
    return pooled, aux


def _check(pooled, aux, mvimages, weight, bias, tag):
    pooled_exp, aux_exp = _reference(mvimages, weight, bias)
    assert aux.shape == aux_exp.shape, tag
    assert pooled.shape == pooled_exp.shape, tag
    assert jnp.allclose(aux, aux_exp, atol=2e-3, rtol=2e-3), tag
    assert jnp.allclose(pooled, pooled_exp, atol=2e-3, rtol=2e-3), tag


def _make_inputs(key, B, V, C, D, H, W, feat):
    F = C * D * H * W
    k_x, k_w, k_b = jax.random.split(key, 3)
    mvimages = jax.random.normal(k_x, (B, V, C, D, H, W), dtype=jnp.float32)
    weight = jax.random.normal(k_w, (F, feat), dtype=jnp.float32) * 0.02
    bias = jax.random.normal(k_b, (feat,), dtype=jnp.float32) * 0.01
    return mvimages, weight, bias


if __name__ == "__main__":
    key = jax.random.PRNGKey(0)
    k1, k2, k3 = jax.random.split(key, 3)

    # --- main demo shapes: B, V, C, D, H, W (single un-padded M tile) -------
    mv1, w1, b1 = _make_inputs(k1, 2, 4, 3, 4, 8, 8, feat=32)
    pooled1, aux1 = view_avg_aggregate(mv1, w1, b1)
    jax.block_until_ready((pooled1, aux1))
    _check(pooled1, aux1, mv1, w1, b1, "case1")

    # --- K tail padding + multi-K-step resident-weight slicing --------------
    mv2, w2, b2 = _make_inputs(k2, 3, 5, 3, 5, 7, 11, feat=20)   # F=1155
    pooled2, aux2 = view_avg_aggregate(mv2, w2, b2)
    _check(pooled2, aux2, mv2, w2, b2, "case2")

    # --- same shapes, streamed (non-resident) weight path -------------------
    pooled2s, aux2s = view_avg_aggregate(mv2, w2, b2,
                                         max_resident_weight_bytes=0)
    _check(pooled2s, aux2s, mv2, w2, b2, "case2_streamed")

    # --- large batch: multi M-tile grid + whole-batch M padding -------------
    mv3, w3, b3 = _make_inputs(k3, 130, 5, 2, 2, 4, 8, feat=24)  # F=128
    pooled3, aux3 = view_avg_aggregate(mv3, w3, b3)
    _check(pooled3, aux3, mv3, w3, b3, "case3")

    print("KERNEL_OK")
</pallas_src>

<mosaic_0001>
module attributes {stable_mosaic.version = 11 : i64} {
  func.func @_agg_kernel(%arg0: i32, %arg1: i32, %arg2: memref<8x768xf32, #tpu.memory_space<vmem>>, %arg3: memref<768x32xbf16, #tpu.memory_space<vmem>>, %arg4: memref<1x32xf32, #tpu.memory_space<vmem>>, %arg5: memref<2x8xf32, #tpu.memory_space<vmem>>, %arg6: memref<8x32xf32, #tpu.memory_space<vmem>>, %arg7: memref<2x32xf32, #tpu.memory_space<vmem>>, %arg8: memref<8x32xf32, #tpu.memory_space<vmem>>) attributes {dimension_semantics = [#tpu.dimension_semantics<parallel>, #tpu.dimension_semantics<arbitrary>], iteration_bounds = array<i64: 1, 1>, scalar_prefetch = 0 : i64, scratch_operands = 1 : i64, tpu.core_type = #tpu.core_type<tc>, window_params = [{transform_indices = @transform_0, window_bounds = array<i64: 8, 768>}, {pipeline_mode = #tpu.pipeline_mode<synchronous>, transform_indices = @transform_1, window_bounds = array<i64: 768, 32>}, {pipeline_mode = #tpu.pipeline_mode<synchronous>, transform_indices = @transform_2, window_bounds = array<i64: 1, 32>}, {pipeline_mode = #tpu.pipeline_mode<synchronous>, transform_indices = @transform_3, window_bounds = array<i64: 2, 8>}, {transform_indices = @transform_4, window_bounds = array<i64: 8, 32>}, {transform_indices = @transform_5, window_bounds = array<i64: 2, 32>}]} {
    %c0_i32 = arith.constant 0 : i32
    %0 = arith.cmpi eq, %arg1, %c0_i32 : i32
    %1 = arith.extui %0 : i1 to i32
    %c0_i32_0 = arith.constant 0 : i32
    %2 = arith.cmpi ne, %1, %c0_i32_0 : i32
    scf.if %2 {
      %cst_9 = arith.constant 0.000000e+00 : f32
      %16 = vector.broadcast %cst_9 : f32 to vector<8x32xf32>
      %c0_10 = arith.constant 0 : index
      %c0_11 = arith.constant 0 : index
      %17 = vector.load %arg8[%c0_10, %c0_11] : memref<8x32xf32, #tpu.memory_space<vmem>>, vector<8x32xf32>
      tpu.vector_store %arg8[%c0_10, %c0_11], %16 {strides = array<i32>} : memref<8x32xf32, #tpu.memory_space<vmem>>, vector<8x32xf32>,
    } else {
    }
    %c0 = arith.constant 0 : index
    %c0_1 = arith.constant 0 : index
    %3 = vector.load %arg2[%c0, %c0_1] : memref<8x768xf32, #tpu.memory_space<vmem>>, vector<8x768xf32>
    %4 = arith.truncf %3 : vector<8x768xf32> to vector<8x768xbf16>
    %c768_i32 = arith.constant 768 : i32
    %5 = arith.muli %arg1, %c768_i32 : i32
    %6 = tpu.assume_multiple %5, 128 : i32
    %7 = arith.index_cast %6 : i32 to index
    %c0_2 = arith.constant 0 : index
    %8 = vector.load %arg3[%7, %c0_2] : memref<768x32xbf16, #tpu.memory_space<vmem>>, vector<768x32xbf16>
    %c0_3 = arith.constant 0 : index
    %c0_4 = arith.constant 0 : index
    %9 = vector.load %arg8[%c0_3, %c0_4] : memref<8x32xf32, #tpu.memory_space<vmem>>, vector<8x32xf32>
    %cst = arith.constant dense<0.000000e+00> : vector<8x32xf32>
    %10 = tpu.matmul %4, %8, %cst {dimension_numbers = #tpu.dot_dimension_numbers<[1], [0], [0], [1], [0, 0, 1, 1], [], []>} : vector<8x768xbf16>, vector<768x32xbf16>, vector<8x32xf32> -> vector<8x32xf32>
    %11 = arith.addf %9, %10 : vector<8x32xf32>
    %c0_5 = arith.constant 0 : index
    %c0_6 = arith.constant 0 : index
    %12 = vector.load %arg8[%c0_5, %c0_6] : memref<8x32xf32, #tpu.memory_space<vmem>>, vector<8x32xf32>
    tpu.vector_store %arg8[%c0_5, %c0_6], %11 {strides = array<i32>} : memref<8x32xf32, #tpu.memory_space<vmem>>, vector<8x32xf32>,
    %c0_i32_7 = arith.constant 0 : i32
    %13 = arith.cmpi eq, %arg1, %c0_i32_7 : i32
    %14 = arith.extui %13 : i1 to i32
    %c0_i32_8 = arith.constant 0 : i32
    %15 = arith.cmpi ne, %14, %c0_i32_8 : i32
    scf.if %15 {
      %c0_9 = arith.constant 0 : index
      %c0_10 = arith.constant 0 : index
      %16 = vector.load %arg8[%c0_9, %c0_10] : memref<8x32xf32, #tpu.memory_space<vmem>>, vector<8x32xf32>
      %c0_11 = arith.constant 0 : index
      %c0_12 = arith.constant 0 : index
      %17 = vector.load %arg4[%c0_11, %c0_12] : memref<1x32xf32, #tpu.memory_space<vmem>>, vector<1x32xf32>
      %18 = vector.broadcast %17 : vector<1x32xf32> to vector<8x32xf32>
      %19 = arith.addf %16, %18 : vector<8x32xf32>
      %c0_13 = arith.constant 0 : index
      %c0_14 = arith.constant 0 : index
      %20 = vector.load %arg6[%c0_13, %c0_14] : memref<8x32xf32, #tpu.memory_space<vmem>>, vector<8x32xf32>
      tpu.vector_store %arg6[%c0_13, %c0_14], %19 {strides = array<i32>} : memref<8x32xf32, #tpu.memory_space<vmem>>, vector<8x32xf32>,
      %c0_15 = arith.constant 0 : index
      %c0_16 = arith.constant 0 : index
      %21 = vector.load %arg5[%c0_15, %c0_16] : memref<2x8xf32, #tpu.memory_space<vmem>>, vector<2x8xf32>
      %cst_17 = arith.constant dense<0.000000e+00> : vector<2x32xf32>
      %22 = tpu.matmul %21, %19, %cst_17 {dimension_numbers = #tpu.dot_dimension_numbers<[1], [0], [0], [1], [0, 0, 1, 1], [], []>} : vector<2x8xf32>, vector<8x32xf32>, vector<2x32xf32> -> vector<2x32xf32>
      %cst_18 = arith.constant 2.500000e-01 : f32
      %23 = vector.broadcast %cst_18 : f32 to vector<2x32xf32>
      %24 = arith.mulf %22, %23 : vector<2x32xf32>
      %c0_19 = arith.constant 0 : index
      %c0_20 = arith.constant 0 : index
      %25 = vector.load %arg7[%c0_19, %c0_20] : memref<2x32xf32, #tpu.memory_space<vmem>>, vector<2x32xf32>
      tpu.vector_store %arg7[%c0_19, %c0_20], %24 {strides = array<i32>} : memref<2x32xf32, #tpu.memory_space<vmem>>, vector<2x32xf32>,
    } else {
    }
    return
  }
  func.func @transform_0(%arg0: i32, %arg1: i32) -> (i32, i32) {
    %c0_i32 = arith.constant 0 : i32
    return %arg0, %arg1 : i32, i32
  }
  func.func @transform_1(%arg0: i32, %arg1: i32) -> (i32, i32) {
    %c0_i32 = arith.constant 0 : i32
    %c0_i32_0 = arith.constant 0 : i32
    %c0_i32_1 = arith.constant 0 : i32
    return %c0_i32, %c0_i32_0 : i32, i32
  }
  func.func @transform_2(%arg0: i32, %arg1: i32) -> (i32, i32) {
    %c0_i32 = arith.constant 0 : i32
    %c0_i32_0 = arith.constant 0 : i32
    %c0_i32_1 = arith.constant 0 : i32
    return %c0_i32, %c0_i32_0 : i32, i32
  }
  func.func @transform_3(%arg0: i32, %arg1: i32) -> (i32, i32) {
    %c0_i32 = arith.constant 0 : i32
    %c0_i32_0 = arith.constant 0 : i32
    %c0_i32_1 = arith.constant 0 : i32
    return %c0_i32, %c0_i32_0 : i32, i32
  }
  func.func @transform_4(%arg0: i32, %arg1: i32) -> (i32, i32) {
    %c0_i32 = arith.constant 0 : i32
    %c0_i32_0 = arith.constant 0 : i32
    return %arg0, %c0_i32 : i32, i32
  }
  func.func @transform_5(%arg0: i32, %arg1: i32) -> (i32, i32) {
    %c0_i32 = arith.constant 0 : i32
    %c0_i32_0 = arith.constant 0 : i32
    return %arg0, %c0_i32 : i32, i32
  }
}

</mosaic_0001>

<bundles_post_ra>
// kernel: view_avg_aggregate.1
= control target key start
LH: loop header
LB: loop body
LE: loop exit
PB: predicated region body
PF: predicated region fallthrough
CT: control target
= control target key end

     0   :  { %11 = vsyncpa [#allocation4], 0  ;;  %s1126_s0 = inlined_call_operand.vmem [shape: f32[8,768], index: 0, kind: input, shape index: {}]   ;;  %s1127_s1 = inlined_call_operand.vmem [shape: bf16[768,32], index: 1, kind: input, shape index: {}]   ;;  %s1128_s2 = inlined_call_operand.vmem [shape: f32[1,32], index: 2, kind: input, shape index: {}]   ;;  %s1129_s3 = inlined_call_operand.vmem [shape: f32[2,8], index: 3, kind: input, shape index: {}]   ;;  %s1130_s4 = inlined_call_operand.hbm [shape: f32[8,32], index: 4, kind: output, shape index: {0}]   ;;  %s1131_s5 = inlined_call_operand.hbm [shape: f32[2,32], index: 5, kind: output, shape index: {1}]  }
   0x1   :  { %v801_v0 = vld [vmem:[%s1127_s1 + $0x40] sm:$0xff]   ;;  %v805_v4 = vld [vmem:[%s1127_s1 + $0x48] sm:$0xff]   ;;  %v809_v8 = vld [vmem:[%s1127_s1 + $0x50] sm:$0xff]  }
   0x2   :  { %v802_v1 = vld [vmem:[%s1127_s1 + $0xc0] sm:$0xff]   ;;  %724 = vmatprep.subr.bf16.mxu0 %v801_v0  ;;  %v806_v5 = vld [vmem:[%s1127_s1 + $0xc8] sm:$0xff]   ;;  %v810_v9 = vld [vmem:[%s1127_s1 + $0xd0] sm:$0xff]  }
   0x3   :  { %v803_v2 = vld [vmem:[%s1127_s1] sm:$0xff]   ;;  %746 = vmatprep.subr.bf16.mxu1 %v802_v1  ;;  %v807_v6 = vld [vmem:[%s1127_s1 + $0x8] sm:$0xff]   ;;  %v811_v10 = vld [vmem:[%s1127_s1 + $0x10] sm:$0xff]  }
   0x4   :  { %v804_v3 = vld [vmem:[%s1127_s1 + $0x80] sm:$0xff]   ;;  %725 = vmatpush3.bf16.msra.mxu0 %v803_v2  ;;  %v808_v7 = vld [vmem:[%s1127_s1 + $0x88] sm:$0xff]   ;;  %v812_v11 = vld [vmem:[%s1127_s1 + $0x90] sm:$0xff]  }
   0x5   :  { %747 = vmatpush3.bf16.msra.mxu1 %v804_v3  ;;  %726 = vmatprep.subr.bf16.mxu0 %v805_v4  ;;  %v813_v12 = vld [vmem:[%s1127_s1 + $0x58] sm:$0xff]   ;;  %v817_v16 = vld [vmem:[%s1127_s1 + $0x60] sm:$0xff]   ;;  %v821_v20 = vld [vmem:[%s1127_s1 + $0x68] sm:$0xff]  }
   0x6   :  { %748 = vmatprep.subr.bf16.mxu1 %v806_v5  ;;  %v814_v13 = vld [vmem:[%s1127_s1 + $0xd8] sm:$0xff]   ;;  %v818_v17 = vld [vmem:[%s1127_s1 + $0xe0] sm:$0xff]   ;;  %v822_v21 = vld [vmem:[%s1127_s1 + $0xe8] sm:$0xff]  }
   0x7   :  { %v815_v14 = vld [vmem:[%s1127_s1 + $0x18] sm:$0xff]   ;;  %v819_v18 = vld [vmem:[%s1127_s1 + $0x20] sm:$0xff]   ;;  %v823_v22 = vld [vmem:[%s1127_s1 + $0x28] sm:$0xff]  }
   0x8   :  { %727 = vmatpush3.bf16.msra.mxu0 %v807_v6  ;;  %v816_v15 = vld [vmem:[%s1127_s1 + $0x98] sm:$0xff]   ;;  %v820_v19 = vld [vmem:[%s1127_s1 + $0xa0] sm:$0xff]   ;;  %v824_v23 = vld [vmem:[%s1127_s1 + $0xa8] sm:$0xff]  }
   0x9   :  { %749 = vmatpush3.bf16.msra.mxu1 %v808_v7  ;;  %728 = vmatprep.subr.bf16.mxu0 %v809_v8  ;;  %v825_v24 = vld [vmem:[%s1127_s1 + $0x70] sm:$0xff]   ;;  %v829_v28 = vld [vmem:[%s1127_s1 + $0x78] sm:$0xff]   ;;  %v29_v32 = vld [vmem:[%s1126_s0 + $0x8] sm:$0xff] }
   0xa   :  { %750 = vmatprep.subr.bf16.mxu1 %v810_v9  ;;  %v826_v25 = vld [vmem:[%s1127_s1 + $0xf0] sm:$0xff]   ;;  %v830_v29 = vld [vmem:[%s1127_s1 + $0xf8] sm:$0xff]   ;;  %v28_v34 = vld [vmem:[%s1126_s0] sm:$0xff]  ;;  %v35_v35 = vpack.c.bf16 %v29_v32, %v29_v32 }
   0xb   :  { %v827_v26 = vld [vmem:[%s1127_s1 + $0x30] sm:$0xff]   ;;  %v831_v30 = vld [vmem:[%s1127_s1 + $0x38] sm:$0xff]   ;;  %v34_v37 = vpack.c.bf16 %v28_v34, %v28_v34  ;;  %v833_v40 = vld [vmem:[%s1127_s1 + $0x140] sm:$0xff]  }
   0xc   :  { %729 = vmatpush3.bf16.msra.mxu0 %v811_v10  ;;  %v828_v27 = vld [vmem:[%s1127_s1 + $0xb0] sm:$0xff]   ;;  %v832_v31 = vld [vmem:[%s1127_s1 + $0xb8] sm:$0xff]   ;;  %462 = vmatprep.mubr.bf16.mxu0 %v35_v35  ;;  %v834_v41 = vld [vmem:[%s1127_s1 + $0x100] sm:$0xff]  }
   0xd   :  { %751 = vmatpush3.bf16.msra.mxu1 %v812_v11  ;;  %730 = vmatprep.subr.bf16.mxu0 %v813_v12  ;;  %v31_v33 = vld [vmem:[%s1126_s0 + $0x18] sm:$0xff]  ;;  %v30_v38 = vld [vmem:[%s1126_s0 + $0x10] sm:$0xff]  ;;  %v835_v42 = vld [vmem:[%s1127_s1 + $0x148] sm:$0xff]  }
   0xe   :  { %752 = vmatprep.subr.bf16.mxu1 %v814_v13  ;;  %v37_v36 = vpack.c.bf16 %v31_v33, %v31_v33  ;;  %v36_v39 = vpack.c.bf16 %v30_v38, %v30_v38  ;;  %v836_v43 = vld [vmem:[%s1127_s1 + $0x108] sm:$0xff]   ;;  %v837_v44 = vld [vmem:[%s1127_s1 + $0x150] sm:$0xff]   ;;  %v839_v46 = vld [vmem:[%s1127_s1 + $0x158] sm:$0xff]  }
   0xf   :  { %v838_v45 = vld [vmem:[%s1127_s1 + $0x110] sm:$0xff]   ;;  %v840_v47 = vld [vmem:[%s1127_s1 + $0x118] sm:$0xff]   ;;  %v841_v48 = vld [vmem:[%s1127_s1 + $0x160] sm:$0xff]  }
  0x10   :  { %731 = vmatpush3.bf16.msra.mxu0 %v815_v14  ;;  %502 = vmatprep.mubr.bf16.mxu1 %v37_v36  ;;  %v33_v49 = vld [vmem:[%s1126_s0 + $0x28] sm:$0xff]  ;;  %v842_v50 = vld [vmem:[%s1127_s1 + $0x120] sm:$0xff]  }
  0x11   :  { %753 = vmatpush3.bf16.msra.mxu1 %v816_v15  ;;  %732 = vmatprep.subr.bf16.mxu0 %v817_v16  ;;  %v39_v51 = vpack.c.bf16 %v33_v49, %v33_v49 }
  0x12   :  { %754 = vmatprep.subr.bf16.mxu1 %v818_v17 }
  0x14   :  { %733 = vmatpush3.bf16.msra.mxu0 %v819_v18 }
  0x15   :  { %755 = vmatpush3.bf16.msra.mxu1 %v820_v19  ;;  %734 = vmatprep.subr.bf16.mxu0 %v821_v20 }
  0x16   :  { %756 = vmatprep.subr.bf16.mxu1 %v822_v21 }
  0x18   :  { %735 = vmatpush3.bf16.msra.mxu0 %v823_v22 }
  0x19   :  { %757 = vmatpush3.bf16.msra.mxu1 %v824_v23  ;;  %736 = vmatprep.subr.bf16.mxu0 %v825_v24 }
  0x1a   :  { %758 = vmatprep.subr.bf16.mxu1 %v826_v25 }
  0x1c   :  { %737 = vmatpush3.bf16.msra.mxu0 %v827_v26 }
  0x1d   :  { %759 = vmatpush3.bf16.msra.mxu1 %v828_v27  ;;  %738 = vmatprep.subr.bf16.mxu0 %v829_v28 }
  0x1e   :  { %760 = vmatprep.subr.bf16.mxu1 %v830_v29 }
  0x20   :  { %739 = vmatpush3.bf16.msra.mxu0 %v831_v30 }
  0x21   :  { %761 = vmatpush3.bf16.msra.mxu1 %v832_v31  ;;  %768 = vmatprep.subr.bf16.mxu0 %v833_v40 }
  0x23   :  { %463 = vmatmul.mubr.bf16.vlgmr.msra.gmra.mrb[0].mxu0 %v34_v37 }
  0x24   :  { %503 = vmatmul.mubr.bf16.vlgmr.msra.gmra.mrb[0].mxu1 %v36_v39  ;;  %769 = vmatpush3.bf16.msra.mxu0 %v834_v41 }
  0x25   :  { %770 = vmatprep.subr.bf16.mxu0 %v835_v42 }
  0x28   :  { %771 = vmatpush3.bf16.msra.mxu0 %v836_v43 }
  0x29   :  { %772 = vmatprep.subr.bf16.mxu0 %v837_v44 }
  0x2c   :  { %773 = vmatpush3.bf16.msra.mxu0 %v838_v45 }
  0x2d   :  { %774 = vmatprep.subr.bf16.mxu0 %v839_v46 }
  0x30   :  { %775 = vmatpush3.bf16.msra.mxu0 %v840_v47 }
  0x31   :  { %12 = vsyncpa [#allocation6], 0  ;;  %776 = vmatprep.subr.bf16.mxu0 %v841_v48  ;;  %v843_v52 = vld [vmem:[%s1127_s1 + $0x168] sm:$0xff]   ;;  %542 = vmatprep.mubr.bf16.mxu0 %v39_v51  ;;  %v845_v54 = vld [vmem:[%s1127_s1 + $0x170] sm:$0xff]   ;;  %vm26_vm0 = vcmask 261120   ;;  %v897_v60 = vmov 0.0  }
  0x32   :  { %v844_v53 = vld [vmem:[%s1127_s1 + $0x128] sm:$0xff]   ;;  %v846_v55 = vld [vmem:[%s1127_s1 + $0x130] sm:$0xff]   ;;  %v847_v56 = vld [vmem:[%s1127_s1 + $0x178] sm:$0xff]   ;;  %27 = vst.msk [vmem:[#allocation2] sm:$0xff] %vm26_vm0, %v897_v60  ;;  %792 = vmatprep.subr.mxu1 %v897_v60  ;;  %vm898_vm1 = vmmov 0   ;;  %vm567_vm2 = vcmask 64512  }
  0x33   :  { %v848_v57 = vld [vmem:[%s1127_s1 + $0x138] sm:$0xff]   ;;  %v32_v58 = vld [vmem:[%s1126_s0 + $0x20] sm:$0xff]  ;;  %794 = vmatprep.mubr.msk.f32.mxu1 %vm898_vm1, %v897_v60  ;;  %s899_s28 = smov [#allocation3]  }
  0x34   :  { %777 = vmatpush3.bf16.msra.mxu0 %v842_v50  ;;  %v38_v59 = vpack.c.bf16 %v32_v58, %v32_v58  ;;  %v722_v16 = vld [vmem:[%s1128_s2] ss:$0 sm:$0xff]  ;;  %s650_s29 = sshll.u32 %s899_s28, 4  ;;  %s651_s29 = int_to_ptr.vmem [resolvable:$true] %s650_s29 }
  0x35   :  { %778 = vmatprep.subr.bf16.mxu0 %v843_v52  ;;  %v566_v19 = vld [vmem:[%s1129_s3] sm:$0x3]  ;;  %s849_s30 = scalar_lea.vmem %s651_s29, 128  ;;  %p854_p1 = scmp.lt.s32.totalorder %s651_s29, %s651_s29 }
  0x36   :  { %p850_p0 = scmp.ne.s32.totalorder %s651_s29, %s849_s30  ;;  %p855_p2 = scmp.lt.s32.totalorder %s849_s30, %s849_s30 }
  0x38   :  { %779 = vmatpush3.bf16.msra.mxu0 %v844_v53  ;;  %p856_p3 = por %p855_p2, %p854_p1 }
  0x39   :  { %780 = vmatprep.subr.bf16.mxu0 %v845_v54  ;;  %v141_v13 = vld [vmem:[#allocation2] sm:$0xff] }
  0x3a   :  { %p857_p4 = pnand %p856_p3, %p850_p0 }
  0x3c   :  { %781 = vmatpush3.bf16.msra.mxu0 %v846_v55 }
  0x3d   :  { %782 = vmatprep.subr.bf16.mxu0 %v847_v56 }
  0x40   :  { %783 = vmatpush3.bf16.msra.mxu0 %v848_v57 }
  0x43   :  { %543 = vmatmul.mubr.bf16.vlgmr.msra.gmra.mrb[4].mxu0 %v38_v59 }
  0xf6   :  { %v740_v61 = vpop.f32.mrb[0].mxu0 }
  0xf7   :  { %v762_v62 = vpop.f32.mrb[0].mxu1  ;;  %v741_v63 = vpop.f32.mrb[1].mxu0 }
  0xf8   :  { %v763_v0 = vpop.f32.mrb[1].mxu1  ;;  %v742_v1 = vadd.f32 %v741_v63, %v740_v61  ;;  %v743_v3 = vpop.f32.mrb[2].mxu0 }
  0xf9   :  { %v764_v2 = vadd.f32 %v763_v0, %v762_v62  ;;  %v765_v4 = vpop.f32.mrb[2].mxu1  ;;  %v744_v5 = vpop.f32.mrb[3].mxu0 }
  0xfa   :  { %v766_v6 = vpop.f32.mrb[3].mxu1 }
  0xfb   :  { %v505_v7 = vadd.f32 %v764_v2, %v742_v1 }
 0x116   :  { %v784_v8 = vpop.f32.mrb[4].mxu0 }
 0x117   :  { %v785_v9 = vpop.f32.mrb[5].mxu0 }
 0x118   :  { %v786_v10 = vadd.f32 %v785_v9, %v784_v8  ;;  %v787_v11 = vpop.f32.mrb[6].mxu0 }
 0x119   :  { %v788_v12 = vpop.f32.mrb[7].mxu0 }
 0x11a   :  { %v545_v14 = vadd.f32 %v786_v10, %v505_v7 }
 0x11c   :  { %v550_v15 = vadd.f32 %v545_v14, %v141_v13 }
 0x11e   :  { %552 = vst.msk [vmem:[#allocation2] sm:$0xff] %vm26_vm0, %v550_v15 }
 0x125   :  { %v556_v17 = vld [vmem:[#allocation2] sm:$0xff] }
 0x126   :  { %v564_v18 = vadd.f32 %v722_v16, %v556_v17 }
 0x128   :  { %793 = vmatpush3.msra.mxu1 %v564_v18  ;;  %565 = vst.msk [vmem:[#allocation3] sm:$0xff] %vm26_vm0, %v564_v18 }
 0x129   :  { %795 = vmatmul.mubr.msk.f32.vlgmr.msra.gmra.mrb[4].mxu1 %vm567_vm2, %v566_v19 }
 0x12a   :  { %860 = shalt.err (!%p857_p4)
}
 0x12b   :  { %s861_s7 = scalar_lea.hbm %s1130_s4, 128 }
 0x12c   :  { %p862_p5 = scmp.ne.s32.totalorder %s1130_s4, %s861_s7  ;;  %p865_p6 = scmp.lt.u32.totalorder %s861_s7, %s1130_s4 }
 0x12e   :  { %p867_p7 = pnand %p865_p6, %p862_p5 }
 0x130   :  { %870 = shalt.err (!%p867_p7)
}
 0x131   :  { %653 = dma.vmem_to_hbm [thread:$0]  %s651_s29, 128, %s1130_s4, [#allocation4]   ;;  %vm642_vm3 = vcmask 254976  }
 0x132   :  { %s900_s13 = smov [#allocation5]  }
 0x133   :  { %s660_s14 = sshll.u32 %s900_s13, 4  ;;  %s661_s14 = int_to_ptr.vmem [resolvable:$true] %s660_s14 }
 0x134   :  { %s871_s15 = scalar_lea.vmem %s661_s14, 32  ;;  %p876_p9 = scmp.lt.s32.totalorder %s661_s14, %s661_s14 }
 0x135   :  { %p872_p8 = scmp.ne.s32.totalorder %s661_s14, %s871_s15  ;;  %p877_p10 = scmp.lt.s32.totalorder %s871_s15, %s871_s15 }
 0x137   :  { %p878_p11 = por %p877_p10, %p876_p9 }
 0x139   :  { %p879_p12 = pnand %p878_p11, %p872_p8 }
 0x1fc   :  { %v637_v20 = vpop.f32.mrb[4].mxu1 }
 0x1fd   :  { %v641_v21 = vmul.f32 0.25, %v637_v20  ;;  %v796_v22 = vpop.f32.mrb[5].mxu1 }
 0x1ff   :  { %643 = vst.msk [vmem:[#allocation5] sm:$0x3] %vm642_vm3, %v641_v21 }
 0x200   :  { %882 = shalt.err (!%p879_p12)
}
 0x201   :  { %s883_s18 = scalar_lea.hbm %s1131_s5, 32 }
 0x202   :  { %p884_p13 = scmp.ne.s32.totalorder %s1131_s5, %s883_s18  ;;  %p887_p0 = scmp.lt.u32.totalorder %s883_s18, %s1131_s5 }
 0x204   :  { %p889_p1 = pnand %p887_p0, %p884_p13 }
 0x206   :  { %892 = shalt.err (!%p889_p1)
}
 0x207   :  { %663 = dma.vmem_to_hbm [thread:$0]  %s661_s14, 32, %s1131_s5, [#allocation6]  }
 0x208   :  { %893 = dma.done.wait [#allocation4], 128  }
 0x209   :  { %894 = vsyncadd [#allocation4], 4294967168 }
 0x20a   :  { %895 = dma.done.wait [#allocation6], 32  }
 0x20b   :  { %896 = vsyncadd [#allocation6], 4294967264 }
 0x20c   :  { %670 = vsyncpa [#allocation4], 1 }
 0x20d   :  { %671 = vsyncpa [#allocation6], 1 }

</bundles_post_ra>
